<compile_context>
chip_gen: v7x
topology: tpu7x:2x2x1
jax: 0.10.0
libtpu: 0.0.40
codegen_flags: <defaults>
</compile_context>

<pallas_src>
import functools

import jax
import jax.numpy as jnp
from jax.experimental import pallas as pl
from jax.experimental.pallas import tpu as pltpu


_Q_DEFAULT = 0.7     # module default
_SUBLANE = 8         # f32 sublane granularity (row-block divisibility)


def _round_up(x, m):
    return ((x + m - 1) // m) * m


def _gce_kernel(logits_ref, targets_ref, loss_ref, *, q):
    # logits_ref: (TN, C) input dtype, targets_ref: (TN, 1) int32,
    # loss_ref:   (TN, 1) float32
    x = logits_ref[...]                                      # (TN, C), f32 or bf16
    t = targets_ref[...]                                     # (TN, 1) int32
    tn, c = x.shape

    # Target-class gather with a broadcast one-hot compare against a (1, C)
    # lane iota (no tile-sized int32 temporary).  Exactly one nonzero per row,
    # so the lane reduce is exact even in bf16.
    cls = jax.lax.broadcasted_iota(jnp.int32, (1, c), 1)     # (1, C)
    onehot = cls == t                                        # (TN, C) bool (broadcast)
    xg = jnp.sum(jnp.where(onehot, x, 0), axis=-1, keepdims=True)   # (TN, 1)
    xg = xg.astype(jnp.float32)

    # Numerically-stable log-sum-exp.  max / subtract stay in the input dtype
    # (bf16 VPU path on v6e/v7x); only the exp argument is widened to f32.
    m = jnp.max(x, axis=-1, keepdims=True)                   # (TN, 1)
    e = jnp.exp((x - m).astype(jnp.float32))                 # (TN, C) f32 (EUP)

    if x.dtype == jnp.bfloat16:
        # bf16 inputs are compute-bound on v6e/v7x: route the class-sum through
        # the otherwise idle MXU so the XLU only handles the gather + max.
        denom = jnp.dot(e, jnp.ones((c, 1), jnp.float32),
                        preferred_element_type=jnp.float32)  # (TN, 1)
    else:
        # f32 inputs are HBM-DMA-bound everywhere; plain XLU reduce is free.
        denom = jnp.sum(e, axis=-1, keepdims=True)           # (TN, 1)

    log_denom = jnp.log(denom) + m.astype(jnp.float32)       # log sum_j exp(x_j)
    log_pg = xg - log_denom                                  # log p[i, target_i]

    qf = jnp.float32(q)
    # loss = (-log p_g) * (p_g**q * q) = (-log p_g) * q * exp(q * log p_g)
    loss = (-log_pg) * (qf * jnp.exp(qf * log_pg))           # (TN, 1) f32
    loss_ref[...] = loss.astype(loss_ref.dtype)


def _vmem_capacity_bytes():
    try:
        info = pltpu.get_tpu_info()
        return int(getattr(info, "vmem_capacity_bytes", 64 * 1024 * 1024))
    except Exception:
        return 64 * 1024 * 1024  # conservative (v7x per-TC physical VMEM)


def _pick_block_rows(n, c, in_itemsize, vmem_cap):
    # Per-row working set: 2x double-buffered input DMA tiles + one-hot mask
    # + the selected tile + the f32 exp tile + small column temps.
    per_row = c * (3 * in_itemsize + 5) + 64
    # Budget ~1/3 of VMEM, capped at 40 MiB so the same sizing also fits
    # v7x's 64 MiB per-TC VMEM while using the larger v5e/v6e capacity.
    budget = min(vmem_cap // 3, 40 * 1024 * 1024)
    rows = max(_SUBLANE, budget // per_row)
    rows = min(rows, 8192)                       # per-step overhead amortized long before this
    rows = min(rows, _round_up(n, _SUBLANE))     # never larger than the array
    if n > _SUBLANE:
        # Keep >= 2 grid steps: pipelines DMA with compute and lets the
        # "parallel" row axis shard across v7x's two TensorCores.
        rows = min(rows, _round_up(pl.cdiv(n, 2), _SUBLANE))
    return max(_SUBLANE, (rows // _SUBLANE) * _SUBLANE)


def generalized_ce_loss(logits, targets, q=_Q_DEFAULT, block_rows=None):
    """logits: (N, C) float (f32 or bf16), targets: (N,) int -> loss (N,) float32."""
    n, c = logits.shape
    in_itemsize = jnp.dtype(logits.dtype).itemsize
    vmem_cap = _vmem_capacity_bytes()

    if block_rows is None:
        block_rows = _pick_block_rows(n, c, in_itemsize, vmem_cap)
    else:
        block_rows = max(_SUBLANE, (block_rows // _SUBLANE) * _SUBLANE)

    grid = (pl.cdiv(n, block_rows),)             # ragged last block handled by Pallas
    targets2d = targets.astype(jnp.int32).reshape(n, 1)

    # Scoped-VMEM limit: double-buffered inputs/outputs plus headroom for the
    # in-kernel f32 temporaries, clamped safely below physical VMEM.
    pipelined = 2 * block_rows * (c * in_itemsize + 4 + 4)
    vmem_limit = int(min(vmem_cap * 9 // 10,
                         max(32 * 1024 * 1024, 3 * pipelined)))

    cost = pl.CostEstimate(
        flops=6 * n * c,
        transcendentals=n * (c + 2),
        bytes_accessed=n * c * in_itemsize + n * 4 + n * 4,
    )

    out = pl.pallas_call(
        functools.partial(_gce_kernel, q=q),
        out_shape=jax.ShapeDtypeStruct((n, 1), jnp.float32),
        grid=grid,
        in_specs=[
            pl.BlockSpec((block_rows, c), lambda i: (i, 0)),
            pl.BlockSpec((block_rows, 1), lambda i: (i, 0)),
        ],
        out_specs=pl.BlockSpec((block_rows, 1), lambda i: (i, 0)),
        compiler_params=pltpu.CompilerParams(
            dimension_semantics=("parallel",),
            vmem_limit_bytes=vmem_limit,
        ),
        cost_estimate=cost,
    )(logits, targets2d)

    return out[:, 0]


def _reference(logits, targets, q=_Q_DEFAULT):
    # pure-JAX reference for sanity checking
    logp = jax.nn.log_softmax(logits.astype(jnp.float32), axis=1)
    logpg = jnp.take_along_axis(logp, targets[:, None], axis=1)[:, 0]
    pg = jnp.exp(logpg)
    return (-logpg) * (pg ** q) * q


if __name__ == "__main__":
    key = jax.random.PRNGKey(0)
    k1, k2 = jax.random.split(key)

    # Small classification batch: 200 samples, 32 classes.  The auto tile size
    # picks 104 rows -> a 2-step grid with a ragged (partial) last block, which
    # exercises the pipelined path and the no-padding edge handling.
    N, C = 200, 32
    logits = jax.random.normal(k1, (N, C), dtype=jnp.float32)
    targets = jax.random.randint(k2, (N,), 0, C, dtype=jnp.int32)

    loss = generalized_ce_loss(logits, targets)
    loss = jax.block_until_ready(loss)

    ref = _reference(logits, targets)
    assert loss.shape == (N,)
    assert bool(jnp.allclose(loss, ref, atol=1e-5, rtol=1e-5)), (loss, ref)

    print("KERNEL_OK")
</pallas_src>

<mosaic_0001>
module attributes {stable_mosaic.version = 11 : i64} {
  func.func @_gce_kernel(%arg0: i32, %arg1: memref<104x32xf32, #tpu.memory_space<vmem>>, %arg2: memref<104x1xi32, #tpu.memory_space<vmem>>, %arg3: memref<104x1xf32, #tpu.memory_space<vmem>>) attributes {dimension_semantics = [#tpu.dimension_semantics<parallel>], iteration_bounds = array<i64: 2>, scalar_prefetch = 0 : i64, scratch_operands = 0 : i64, tpu.core_type = #tpu.core_type<tc>, window_params = [{transform_indices = @transform_0, window_bounds = array<i64: 104, 32>}, {transform_indices = @transform_1, window_bounds = array<i64: 104, 1>}, {transform_indices = @transform_2, window_bounds = array<i64: 104, 1>}]} {
    %c0 = arith.constant 0 : index
    %c0_0 = arith.constant 0 : index
    %0 = vector.load %arg1[%c0, %c0_0] : memref<104x32xf32, #tpu.memory_space<vmem>>, vector<104x32xf32>
    %c0_1 = arith.constant 0 : index
    %c0_2 = arith.constant 0 : index
    %1 = vector.load %arg2[%c0_1, %c0_2] : memref<104x1xi32, #tpu.memory_space<vmem>>, vector<104x1xi32>
    %2 = tpu.iota {dimensions = array<i32: 1>} : vector<1x32xi32>
    %3 = vector.broadcast %2 : vector<1x32xi32> to vector<104x32xi32>
    %4 = vector.broadcast %1 : vector<104x1xi32> to vector<104x32xi32>
    %5 = arith.cmpi eq, %3, %4 : vector<104x32xi32>
    %c0_i32 = arith.constant 0 : i32
    %6 = arith.sitofp %c0_i32 : i32 to f32
    %7 = vector.broadcast %6 : f32 to vector<104x32xf32>
    %8 = arith.select %5, %0, %7 : vector<104x32xi1>, vector<104x32xf32>
    %cst = arith.constant dense<0.000000e+00> : vector<104xf32>
    %9 = vector.multi_reduction <add>, %8, %cst [1] : vector<104x32xf32> to vector<104xf32>
    %10 = vector.shape_cast %9 : vector<104xf32> to vector<104x1xf32>
    %cst_3 = arith.constant dense<0xFF800000> : vector<104xf32>
    %11 = vector.multi_reduction <maximumf>, %0, %cst_3 [1] : vector<104x32xf32> to vector<104xf32>
    %12 = vector.shape_cast %11 : vector<104xf32> to vector<104x1xf32>
    %13 = vector.broadcast %12 : vector<104x1xf32> to vector<104x32xf32>
    %14 = arith.subf %0, %13 : vector<104x32xf32>
    %15 = math.exp %14 : vector<104x32xf32>
    %cst_4 = arith.constant dense<0.000000e+00> : vector<104xf32>
    %16 = vector.multi_reduction <add>, %15, %cst_4 [1] : vector<104x32xf32> to vector<104xf32>
    %17 = vector.shape_cast %16 : vector<104xf32> to vector<104x1xf32>
    %18 = math.log %17 : vector<104x1xf32>
    %19 = arith.addf %18, %12 : vector<104x1xf32>
    %20 = arith.subf %10, %19 : vector<104x1xf32>
    %cst_5 = arith.constant 0.000000e+00 : f32
    %21 = vector.broadcast %cst_5 : f32 to vector<104x1xf32>
    %22 = arith.subf %21, %20 : vector<104x1xf32>
    %cst_6 = arith.constant 0.699999988 : f32
    %23 = vector.broadcast %cst_6 : f32 to vector<104x1xf32>
    %24 = arith.mulf %23, %20 : vector<104x1xf32>
    %25 = math.exp %24 : vector<104x1xf32>
    %cst_7 = arith.constant 0.699999988 : f32
    %26 = vector.broadcast %cst_7 : f32 to vector<104x1xf32>
    %27 = arith.mulf %26, %25 : vector<104x1xf32>
    %28 = arith.mulf %22, %27 : vector<104x1xf32>
    %c0_8 = arith.constant 0 : index
    %c0_9 = arith.constant 0 : index
    %29 = vector.load %arg3[%c0_8, %c0_9] : memref<104x1xf32, #tpu.memory_space<vmem>>, vector<104x1xf32>
    tpu.vector_store %arg3[%c0_8, %c0_9], %28 {strides = array<i32>} : memref<104x1xf32, #tpu.memory_space<vmem>>, vector<104x1xf32>,
    return
  }
  func.func @transform_0(%arg0: i32) -> (i32, i32) {
    %c0_i32 = arith.constant 0 : i32
    %c0_i32_0 = arith.constant 0 : i32
    return %arg0, %c0_i32 : i32, i32
  }
  func.func @transform_1(%arg0: i32) -> (i32, i32) {
    %c0_i32 = arith.constant 0 : i32
    %c0_i32_0 = arith.constant 0 : i32
    return %arg0, %c0_i32 : i32, i32
  }
  func.func @transform_2(%arg0: i32) -> (i32, i32) {
    %c0_i32 = arith.constant 0 : i32
    %c0_i32_0 = arith.constant 0 : i32
    return %arg0, %c0_i32 : i32, i32
  }
}

</mosaic_0001>

<bundles_post_ra>
// kernel: tpu_custom_call.1
= control target key start
LH: loop header
LB: loop body
LE: loop exit
PB: predicated region body
PF: predicated region fallthrough
CT: control target
= control target key end

     0   :  { %s1176_s9 = smov 0   ;;  %s1178_s10 = smov 0   ;;  %s1570_s0 = inlined_call_operand.vmem [shape: f32[200,32], index: 0, kind: input, shape index: {}]   ;;  %s1571_s1 = inlined_call_operand.vmem [shape: s32[200,1], index: 1, kind: input, shape index: {}]   ;;  %s1572_s2 = inlined_call_operand.vmem [shape: f32[200,1], index: 2, kind: output, shape index: {}]  }
   0x1   :  { %s1180_s11 = smov 0  }
   0x2 LB: > { %s1189_s12 = sadd.s32 4294967295, %s1126_s11   ;;  %s1191_s13 = sadd.s32 1, %s1126_s11   ;;  %s1126_s11 = sphi %s1180_s11, %s1579_s11   ;;  %s1122_s10 = sphi %s1178_s10, %s1578_s10   ;;  %s1118_s9 = sphi %s1176_s9, %s1577_s9  }
   0x3   : > { %s68_s14 = ssub.s32 %s1126_s11, %s1191_s13  ;;  %s71_s15 = sadd.s32 1, %s1122_s10 }
   0x4   : > { %p69_p0 = scmp.eq.s32.totalorder %s68_s14, 0  ;;  %p81_p1 = scmp.ne.s32.totalorder %s1122_s10, %s1118_s9 }
   0x5   : > { %p82_p2 = scmp.eq.s32.totalorder %s1189_s12, 1  ;;  %p881_p3 = scmp.ge.s32.totalorder %s1126_s11, 1 }
   0x6   : > { %s1199_s16 = scalar_select %p69_p0, %s1122_s10, %s71_s15  }
   0x7   : > { %p1201_p4 = por %p82_p2, %p81_p1  ;;  %p140_p5 = scmp.lt.s32.totalorder %s1126_s11, 3 }
   0x9   : > { %p141_p6 = pnand %p881_p3, %p140_p5 }
   0xa   : > { %s1206_s18 = smul.u32 (!%p141_p6), 13, %s1189_s12  ;;  %v1160_v0 = vmov (!%p141_p6), 0   ;;  %vm300_vm0 = vcmask (!%p141_p6), 261120   ;;  %v233_v50 = vlaneseq (!%p141_p6)  ;;  %s171_s27 = sand.u32 (!%p141_p6), 1, %s1118_s9   ;;  %vm587_vm14 = vcmask (!%p141_p6), 7168  }
   0xb   : > { %144 = sbr.rel (%p141_p6) target bundleno = 474 (0x1da), region = 28  ;;  %988 = vset.pattern.permute.xlu1 (!%p141_p6), %v1160_v0  ;;  %989 = vset.pattern.permute.xlu0 (!%p141_p6), %v1160_v0 }
   0xc   : > { %p179_p7 = scmp.lt.s32.totalorder (!%p141_p6), %s1206_s18, 24  ;;  %v1314_v53 = vand.u32 (!%p141_p6), 127, %v233_v50  ;;  %s1423_s28 = smul.u32 (!%p141_p6), 104, %s171_s27 }
   0xe   : > { %s1440_s29 = scalar_lea.vmem (!%p141_p6), [#allocation2], %s1423_s28  }
  0x12   : > { %s1210_s19 = scalar_select %p179_p7, %s1206_s18, 24 }
  0x13   : > { %s609_s30 = ssub.s32 (%p1201_p4), 25, %s1206_s18  ;;  %s896_s3 = smul.u32 (%p1201_p4), 104, %s1189_s12 }
  0x14   : > { %s882_s20 = sshll.u32 %s1210_s19, 3  ;;  %p610_p8 = scmp.lt.s32.totalorder (%p1201_p4), %s609_s30, 13 }
  0x15   : > { %s1218_s23 = scalar_lea.vmem %s1570_s0, %s882_s20  ;;  %s196_s26 = scalar_lea.vmem %s1571_s1, %s882_s20 }
  0x16   : > { %v1221_v1 = vld [vmem:[%s1218_s23 + $0x10] sm:$0xff]  ;;  %v1224_v2 = vld [vmem:[%s1218_s23] sm:$0xff]  ;;  %v1227_v3 = vld [vmem:[%s1218_s23 + $0x18] sm:$0xff]  ;;  %s1488_s6 = scalar_lea.vmem (%p1201_p4), %s1572_s2, %s896_s3  }
  0x17   : > { %v346_v4 = vsel %vm300_vm0, %v1221_v1, -inf  ;;  %v340_v5 = vsel %vm300_vm0, %v1224_v2, -inf  ;;  %v1234_v6 = vld [vmem:[%s1218_s23 + $0x8] sm:$0xff]  ;;  %v349_v7 = vsel %vm300_vm0, %v1227_v3, -inf  ;;  %v1244_v10 = vld [vmem:[%s1218_s23 + $0x20] sm:$0xff]  ;;  %v1251_v13 = vld [vmem:[%s1218_s23 + $0x38] sm:$0xff] }
  0x18   : > { %347 = vmax.xlane.f32.xlu1 %v346_v4  ;;  %341 = vmax.xlane.f32.xlu0 %v340_v5  ;;  %v343_v8 = vsel %vm300_vm0, %v1234_v6, -inf  ;;  %v1241_v9 = vld [vmem:[%s1218_s23 + $0x28] sm:$0xff]  ;;  %v352_v12 = vsel %vm300_vm0, %v1244_v10, -inf  ;;  %v1254_v14 = vld [vmem:[%s1218_s23 + $0x30] sm:$0xff]  ;;  %v361_v15 = vsel %vm300_vm0, %v1251_v13, -inf  ;;  %v1264_v18 = vld [vmem:[%s1218_s23 + $0x40] sm:$0xff] }
  0x19   : > { %v355_v11 = vsel %vm300_vm0, %v1241_v9, -inf  ;;  %v358_v16 = vsel %vm300_vm0, %v1254_v14, -inf  ;;  %v1261_v17 = vld [vmem:[%s1218_s23 + $0x48] sm:$0xff]  ;;  %v364_v20 = vsel %vm300_vm0, %v1264_v18, -inf  ;;  %v1271_v21 = vld [vmem:[%s1218_s23 + $0x58] sm:$0xff]  ;;  %v1274_v22 = vld [vmem:[%s1218_s23 + $0x50] sm:$0xff] }
  0x1a   : > { %v367_v19 = vsel %vm300_vm0, %v1261_v17, -inf  ;;  %v373_v23 = vsel %vm300_vm0, %v1271_v21, -inf  ;;  %v370_v24 = vsel %vm300_vm0, %v1274_v22, -inf  ;;  %v1281_v25 = vld [vmem:[%s1218_s23 + $0x60] sm:$0xff]  ;;  %v222_v28 = vld [vmem:[%s196_s26 + $0x10] sm:$0xff]  ;;  %v223_v29 = vld [vmem:[%s196_s26 + $0x18] sm:$0xff] }
  0x1b   : > { %v376_v26 = vsel %vm300_vm0, %v1281_v25, -inf  ;;  %v220_v27 = vld [vmem:[%s196_s26] sm:$0xff]  ;;  %v221_v30 = vld [vmem:[%s196_s26 + $0x8] sm:$0xff]  ;;  %v230_v32 = vld [vmem:[%s196_s26 + $0x50] sm:$0xff] }
  0x1c   : > { %350 = vmax.xlane.f32.xlu1 %v349_v7  ;;  %344 = vmax.xlane.f32.xlu0 %v343_v8  ;;  %v224_v31 = vld [vmem:[%s196_s26 + $0x20] sm:$0xff]  ;;  %v225_v33 = vld [vmem:[%s196_s26 + $0x28] sm:$0xff]  ;;  %v226_v35 = vld [vmem:[%s196_s26 + $0x30] sm:$0xff] }
  0x1d   : > { %v232_v34 = vld [vmem:[%s196_s26 + $0x60] sm:$0xff]  ;;  %v227_v36 = vld [vmem:[%s196_s26 + $0x38] sm:$0xff]  ;;  %v229_v38 = vld [vmem:[%s196_s26 + $0x48] sm:$0xff] }
  0x1e   : > { %v228_v37 = vld [vmem:[%s196_s26 + $0x40] sm:$0xff]  ;;  %v231_v39 = vld [vmem:[%s196_s26 + $0x58] sm:$0xff] }
  0x20   : > { %356 = vmax.xlane.f32.xlu1 %v355_v11  ;;  %353 = vmax.xlane.f32.xlu0 %v352_v12 }
  0x24   : > { %362 = vmax.xlane.f32.xlu1 %v361_v15  ;;  %359 = vmax.xlane.f32.xlu0 %v358_v16 }
  0x28   : > { %368 = vmax.xlane.f32.xlu1 %v367_v19  ;;  %365 = vmax.xlane.f32.xlu0 %v364_v20 }
  0x2c   : > { %374 = vmax.xlane.f32.xlu1 %v373_v23  ;;  %371 = vmax.xlane.f32.xlu0 %v370_v24 }
  0x30   : > { %377 = vmax.xlane.f32.xlu0 %v376_v26 }
  0x3d   : > { %236 = vperm.xlu1 %988, %v220_v27  }
  0x41   : > { %242 = vperm.xlu1 %988, %v222_v28  }
  0x45   : > { %245 = vperm.xlu1 %988, %v223_v29  }
  0x46   : > { %239 = vperm.xlu0 %989, %v221_v30  }
  0x49   : > { %248 = vperm.xlu1 %988, %v224_v31  }
  0x4a   : > { %266 = vperm.xlu0 %989, %v230_v32  }
  0x4d   : > { %251 = vperm.xlu1 %988, %v225_v33  }
  0x4e   : > { %272 = vperm.xlu0 %989, %v232_v34  }
  0x51   : > { %254 = vperm.xlu1 %988, %v226_v35  }
  0x55   : > { %257 = vperm.xlu1 %988, %v227_v36  }
  0x59   : > { %260 = vperm.xlu1 %988, %v228_v37  }
  0x5d   : > { %263 = vperm.xlu1 %988, %v229_v38  }
  0x61   : > { %269 = vperm.xlu1 %988, %v231_v39  }
  0xa5   : > { %v1290_v40 = vpop.xlane.xlu1 %347  ;;  %v1292_v41 = vpop.xlane.xlu0 %341 }
  0xa6   : > { %v379_v52 = vsub.f32 %v1224_v2, %v1292_v41  ;;  %v381_v56 = vsub.f32 %v1221_v1, %v1290_v40 }
  0xa8   : > { %v392_v58 = vmul.f32 1.442695, %v379_v52  ;;  %v396_v63 = vmul.f32 1.442695, %v381_v56 }
  0xa9   : > { %v1294_v42 = vpop.xlane.xlu1 %350  ;;  %v1296_v43 = vpop.xlane.xlu0 %344 }
  0xaa   : > { %v380_v54 = vsub.f32 %v1234_v6, %v1296_v43  ;;  %v382_v59 = vsub.f32 %v1227_v3, %v1294_v42  ;;  %990 = vpow2.f32 %v392_v58 }
  0xac   : > { %v394_v60 = vmul.f32 1.442695, %v380_v54  ;;  %v398_v7 = vmul.f32 1.442695, %v382_v59 }
  0xad   : > { %v1298_v44 = vpop.xlane.xlu1 %356  ;;  %v1300_v45 = vpop.xlane.xlu0 %353 }
  0xae   : > { %v384_v5 = vsub.f32 %v1241_v9, %v1298_v44  ;;  %992 = vpow2.f32 %v394_v60  ;;  %v383_v8 = vsub.f32 %v1244_v10, %v1300_v45 }
  0xaf   : > { %994 = vpow2.f32 %v396_v63 }
  0xb0   : > { %v402_v16 = vmul.f32 1.442695, %v384_v5  ;;  %996 = vpow2.f32 %v398_v7  ;;  %v400_v20 = vmul.f32 1.442695, %v383_v8 }
  0xb1   : > { %v1302_v46 = vpop.xlane.xlu1 %362  ;;  %v1304_v47 = vpop.xlane.xlu0 %359 }
  0xb2   : > { %v386_v19 = vsub.f32 %v1251_v13, %v1302_v46  ;;  %v385_v23 = vsub.f32 %v1254_v14, %v1304_v47  ;;  %998 = vpow2.f32 %v402_v16 }
  0xb3   : > { %1000 = vpow2.f32 %v400_v20 }
  0xb4   : > { %v406_v28 = vmul.f32 1.442695, %v386_v19  ;;  %v404_v30 = vmul.f32 1.442695, %v385_v23  ;;  %v991_v32 = vpop.eup %990 }
  0xb5   : > { %v1306_v48 = vpop.xlane.xlu1 %368  ;;  %v1308_v49 = vpop.xlane.xlu0 %365  ;;  %v418_v50 = vsel %vm300_vm0, %v991_v32, 0.0 }
  0xb6   : > { %v388_v29 = vsub.f32 %v1261_v17, %v1306_v48  ;;  %v387_v31 = vsub.f32 %v1264_v18, %v1308_v49  ;;  %1002 = vpow2.f32 %v406_v28 }
  0xb7   : > { %1004 = vpow2.f32 %v404_v30 }
  0xb8   : > { %v410_v35 = vmul.f32 1.442695, %v388_v29  ;;  %v408_v38 = vmul.f32 1.442695, %v387_v31 }
  0xb9   : > { %v1310_v51 = vpop.xlane.xlu1 %374  ;;  %v1318_v55 = vpop.xlane.xlu0 %371 }
  0xba   : > { %v390_v36 = vsub.f32 %v1271_v21, %v1310_v51  ;;  %v389_v39 = vsub.f32 %v1274_v22, %v1318_v55  ;;  %1006 = vpow2.f32 %v410_v35 }
  0xbb   : > { %1008 = vpow2.f32 %v408_v38 }
  0xbc   : > { %v414_v56 = vmul.f32 1.442695, %v390_v36 }
  0xbd   : > { %v237_v57 = vpop.permute.xlu1 %236  ;;  %v1327_v0 = vpop.xlane.xlu0 %377 }
  0xbe   : > { %vm274_vm1 = vcmp.eq.s32.totalorder %v1314_v53, %v237_v57  ;;  %v412_v57 = vmul.f32 1.442695, %v389_v39  ;;  %v391_v58 = vsub.f32 %v1281_v25, %v1327_v0  ;;  %1010 = vpow2.f32 %v414_v56 }
  0xbf   : > { %v287_v61 = vsel %vm274_vm1, %v1224_v2, 0.0 }
  0xc0   : > { %v301_v62 = vsel %vm300_vm0, %v287_v61, 0.0  ;;  %1012 = vpow2.f32 %v412_v57  ;;  %v416_v63 = vmul.f32 1.442695, %v391_v58 }
  0xc1   : > { %v243_v4 = vpop.permute.xlu1 %242  ;;  %302 = vadd.xlane.f32.xlu1 %v301_v62 }
  0xc2   : > { %vm276_vm2 = vcmp.eq.s32.totalorder %v1314_v53, %v243_v4  ;;  %1014 = vpow2.f32 %v416_v63 }
  0xc3   : > { %v289_v2 = vsel %vm276_vm2, %v1221_v1, 0.0 }
  0xc4   : > { %v307_v11 = vsel %vm300_vm0, %v289_v2, 0.0 }
  0xc5   : > { %v246_v12 = vpop.permute.xlu1 %245  ;;  %v240_v15 = vpop.permute.xlu0 %239  ;;  %308 = vadd.xlane.f32.xlu1 %v307_v11 }
  0xc6   : > { %vm277_vm3 = vcmp.eq.s32.totalorder %v1314_v53, %v246_v12  ;;  %vm275_vm4 = vcmp.eq.s32.totalorder %v1314_v53, %v240_v15 }
  0xc7   : > { %v288_v1 = vsel %vm275_vm4, %v1234_v6, 0.0  ;;  %v290_v27 = vsel %vm277_vm3, %v1227_v3, 0.0  ;;  %v993_v3 = vpop.eup %992 }
  0xc8   : > { %v304_v24 = vsel %vm300_vm0, %v288_v1, 0.0  ;;  %v310_v33 = vsel %vm300_vm0, %v290_v27, 0.0  ;;  %v995_v37 = vpop.eup %994 }
  0xc9   : > { %v249_v26 = vpop.permute.xlu1 %248  ;;  %305 = vadd.xlane.f32.xlu0 %v304_v24  ;;  %v997_v52 = vpop.eup %996  ;;  %v424_v60 = vsel %vm300_vm0, %v995_v37, 0.0 }
  0xca   : > { %vm278_vm5 = vcmp.eq.s32.totalorder %v1314_v53, %v249_v26  ;;  %v999_v59 = vpop.eup %998  ;;  %v427_v61 = vsel %vm300_vm0, %v997_v52, 0.0  ;;  %v267_v30 = vpop.permute.xlu0 %266 }
  0xcb   : > { %v291_v6 = vsel %vm278_vm5, %v1244_v10, 0.0  ;;  %v421_v10 = vsel %vm300_vm0, %v993_v3, 0.0  ;;  %v1001_v62 = vpop.eup %1000  ;;  %v433_v8 = vsel %vm300_vm0, %v999_v59, 0.0  ;;  %vm284_vm9 = vcmp.eq.s32.totalorder %v1314_v53, %v267_v30 }
  0xcc   : > { %v313_v34 = vsel %vm300_vm0, %v291_v6, 0.0  ;;  %v1003_v5 = vpop.eup %1002  ;;  %v430_v7 = vsel %vm300_vm0, %v1001_v62, 0.0  ;;  %v297_v38 = vsel %vm284_vm9, %v1274_v22, 0.0 }
  0xcd   : > { %311 = vadd.xlane.f32.xlu0 %v310_v33  ;;  %314 = vadd.xlane.f32.xlu1 %v313_v34  ;;  %v252_v54 = vpop.permute.xlu1 %251  ;;  %v1005_v2 = vpop.eup %1004  ;;  %v439_v15 = vsel %vm300_vm0, %v1003_v5, 0.0  ;;  %v331_v39 = vsel %vm300_vm0, %v297_v38, 0.0 }
  0xce   : > { %v1007_v11 = vpop.eup %1006  ;;  %v436_v12 = vsel %vm300_vm0, %v1005_v2, 0.0  ;;  %vm279_vm7 = vcmp.eq.s32.totalorder %v1314_v53, %v252_v54 }
  0xcf   : > { %v1009_v16 = vpop.eup %1008  ;;  %v445_v1 = vsel %vm300_vm0, %v1007_v11, 0.0  ;;  %v292_v34 = vsel %vm279_vm7, %v1241_v9, 0.0 }
  0xd0   : > { %v1011_v20 = vpop.eup %1010  ;;  %v442_v23 = vsel %vm300_vm0, %v1009_v16, 0.0  ;;  %v316_v35 = vsel %vm300_vm0, %v292_v34, 0.0 }
  0xd1   : > { %422 = vadd.xlane.f32.xlu0 %v421_v10  ;;  %419 = vadd.xlane.f32.xlu1 %v418_v50  ;;  %v255_v4 = vpop.permute.xlu1 %254  ;;  %v1013_v24 = vpop.eup %1012  ;;  %v451_v28 = vsel %vm300_vm0, %v1011_v20, 0.0 }
  0xd2   : > { %vm280_vm6 = vcmp.eq.s32.totalorder %v1314_v53, %v255_v4  ;;  %v448_v27 = vsel %vm300_vm0, %v1013_v24, 0.0  ;;  %v1015_v29 = vpop.eup %1014 }
  0xd3   : > { %v293_v31 = vsel %vm280_vm6, %v1254_v14, 0.0  ;;  %v454_v6 = vsel %vm300_vm0, %v1015_v29, 0.0  ;;  %v273_v14 = vpop.permute.xlu0 %272 }
  0xd4   : > { %v319_v32 = vsel %vm300_vm0, %v293_v31, 0.0  ;;  %vm286_vm11 = vcmp.eq.s32.totalorder %v1314_v53, %v273_v14 }
  0xd5   : > { %425 = vadd.xlane.f32.xlu0 %v424_v60  ;;  %428 = vadd.xlane.f32.xlu1 %v427_v61  ;;  %v258_v19 = vpop.permute.xlu1 %257  ;;  %v299_v50 = vsel %vm286_vm11, %v1281_v25, 0.0 }
  0xd6   : > { %vm281_vm10 = vcmp.eq.s32.totalorder %v1314_v53, %v258_v19  ;;  %v337_v22 = vsel %vm300_vm0, %v299_v50, 0.0 }
  0xd7   : > { %v294_v37 = vsel %vm281_vm10, %v1251_v13, 0.0 }
  0xd9   : > { %431 = vadd.xlane.f32.xlu0 %v430_v7  ;;  %434 = vadd.xlane.f32.xlu1 %v433_v8  ;;  %v261_v26 = vpop.permute.xlu1 %260 }
  0xda   : > { %vm282_vm8 = vcmp.eq.s32.totalorder %v1314_v53, %v261_v26 }
  0xdb   : > { %v295_v3 = vsel %vm282_vm8, %v1264_v18, 0.0  ;;  %v322_v18 = vsel %vm300_vm0, %v294_v37, 0.0 }
  0xdc   : > { %v325_v36 = vsel %vm300_vm0, %v295_v3, 0.0 }
  0xdd   : > { %437 = vadd.xlane.f32.xlu0 %v436_v12  ;;  %440 = vadd.xlane.f32.xlu1 %v439_v15  ;;  %v264_v33 = vpop.permute.xlu1 %263 }
  0xde   : > { %vm283_vm12 = vcmp.eq.s32.totalorder %v1314_v53, %v264_v33 }
  0xdf   : > { %v296_v10 = vsel %vm283_vm12, %v1261_v17, 0.0 }
  0xe0   : > { %v328_v13 = vsel %vm300_vm0, %v296_v10, 0.0 }
  0xe1   : > { %443 = vadd.xlane.f32.xlu0 %v442_v23  ;;  %446 = vadd.xlane.f32.xlu1 %v445_v1  ;;  %v270_v9 = vpop.permute.xlu1 %269 }
  0xe2   : > { %vm285_vm13 = vcmp.eq.s32.totalorder %v1314_v53, %v270_v9 }
  0xe3   : > { %v298_v52 = vsel %vm285_vm13, %v1271_v21, 0.0 }
  0xe4   : > { %v334_v54 = vsel %vm300_vm0, %v298_v52, 0.0 }
  0xe5   : > { %449 = vadd.xlane.f32.xlu0 %v448_v27  ;;  %452 = vadd.xlane.f32.xlu1 %v451_v28 }
  0xe9   : > { %455 = vadd.xlane.f32.xlu0 %v454_v6  ;;  %320 = vadd.xlane.f32.xlu1 %v319_v32 }
  0xed   : > { %317 = vadd.xlane.f32.xlu0 %v316_v35  ;;  %326 = vadd.xlane.f32.xlu1 %v325_v36 }
  0xf1   : > { %323 = vadd.xlane.f32.xlu0 %v322_v18  ;;  %332 = vadd.xlane.f32.xlu1 %v331_v39 }
  0xf5   : > { %329 = vadd.xlane.f32.xlu0 %v328_v13  ;;  %338 = vadd.xlane.f32.xlu1 %v337_v22 }
  0xf9   : > { %335 = vadd.xlane.f32.xlu0 %v334_v54 }
 0x14e   : > { %v303_v56 = vpop.xlane.xlu1 %302 }
 0x152   : > { %v309_v57 = vpop.xlane.xlu1 %308 }
 0x156   : > { %v306_v58 = vpop.xlane.xlu0 %305 }
 0x15a   : > { %v312_v59 = vpop.xlane.xlu0 %311  ;;  %v315_v17 = vpop.xlane.xlu1 %314 }
 0x15e   : > { %v423_v60 = vpop.xlane.xlu0 %422  ;;  %v420_v25 = vpop.xlane.xlu1 %419 }
 0x15f   : > { %1016 = vlog2.f32 %v423_v60 }
 0x160   : > { %1018 = vlog2.f32 %v420_v25 }
 0x162   : > { %v426_v53 = vpop.xlane.xlu0 %425  ;;  %v429_v61 = vpop.xlane.xlu1 %428 }
 0x163   : > { %1020 = vlog2.f32 %v426_v53 }
 0x164   : > { %1022 = vlog2.f32 %v429_v61 }
 0x166   : > { %v432_v62 = vpop.xlane.xlu0 %431  ;;  %v435_v63 = vpop.xlane.xlu1 %434 }
 0x167   : > { %1024 = vlog2.f32 %v432_v62 }
 0x168   : > { %1026 = vlog2.f32 %v435_v63 }
 0x169   : > { %v1017_v21 = vpop.eup %1016 }
 0x16a   : > { %v1019_v4 = vpop.eup %1018  ;;  %v460_v5 = vmul.f32 0.6931472, %v1017_v21  ;;  %v438_v7 = vpop.xlane.xlu0 %437 }
 0x16b   : > { %v441_v8 = vpop.xlane.xlu1 %440  ;;  %v458_v2 = vmul.f32 0.6931472, %v1019_v4  ;;  %1028 = vlog2.f32 %v438_v7 }
 0x16c   : > { %v484_v11 = vadd.f32 %v460_v5, %v1296_v43  ;;  %1030 = vlog2.f32 %v441_v8 }
 0x16d   : > { %v1021_v12 = vpop.eup %1020  ;;  %v483_v15 = vadd.f32 %v458_v2, %v1292_v41 }
 0x16e   : > { %v1023_v16 = vpop.eup %1022  ;;  %v1398_v19 = vsub.f32 %v306_v58, %v484_v11  ;;  %v462_v20 = vmul.f32 0.6931472, %v1021_v12  ;;  %v444_v23 = vpop.xlane.xlu0 %443 }
 0x16f   : > { %v447_v1 = vpop.xlane.xlu1 %446  ;;  %v1400_v24 = vsub.f32 %v303_v56, %v483_v15  ;;  %v464_v26 = vmul.f32 0.6931472, %v1023_v16  ;;  %1032 = vlog2.f32 %v444_v23 }
 0x170   : > { %v523_v27 = vmul.f32 0.7, %v1398_v19  ;;  %v485_v28 = vadd.f32 %v462_v20, %v1290_v40  ;;  %1034 = vlog2.f32 %v447_v1  ;;  %v510_v5 = vsub.f32 0.0, %v1398_v19 }
 0x171   : > { %v1025_v43 = vpop.eup %1024  ;;  %v522_v29 = vmul.f32 0.7, %v1400_v24  ;;  %v486_v41 = vadd.f32 %v464_v26, %v1294_v42  ;;  %v509_v7 = vsub.f32 0.0, %v1400_v24 }
 0x172   : > { %v1027_v30 = vpop.eup %1026  ;;  %v537_v31 = vmul.f32 1.442695, %v523_v27  ;;  %v1406_v6 = vsub.f32 %v309_v57, %v485_v28  ;;  %v466_v32 = vmul.f32 0.6931472, %v1025_v43  ;;  %v450_v33 = vpop.xlane.xlu0 %449 }
 0x173   : > { %v453_v34 = vpop.xlane.xlu1 %452  ;;  %v535_v3 = vmul.f32 1.442695, %v522_v29  ;;  %v1408_v14 = vsub.f32 %v312_v59, %v486_v41  ;;  %1036 = vlog2.f32 %v450_v33  ;;  %v468_v37 = vmul.f32 0.6931472, %v1027_v30 }
 0x174   : > { %1038 = vpow2.f32 %v537_v31  ;;  %v524_v40 = vmul.f32 0.7, %v1406_v6  ;;  %v487_v35 = vadd.f32 %v466_v32, %v1300_v45 }
 0x175   : > { %v1029_v36 = vpop.eup %1028  ;;  %1040 = vpow2.f32 %v535_v3  ;;  %v525_v42 = vmul.f32 0.7, %v1408_v14  ;;  %v488_v56 = vadd.f32 %v468_v37, %v1298_v44  ;;  %v512_v3 = vsub.f32 0.0, %v1408_v14 }
 0x176   : > { %v1031_v38 = vpop.eup %1030  ;;  %v539_v9 = vmul.f32 1.442695, %v524_v40  ;;  %v1413_v18 = vsub.f32 %v315_v17, %v487_v35  ;;  %v470_v39 = vmul.f32 0.6931472, %v1029_v36  ;;  %1042 = vlog2.f32 %v453_v34  ;;  %v456_v10 = vpop.xlane.xlu0 %455 }
 0x177   : > { %v321_v50 = vpop.xlane.xlu1 %320  ;;  %v541_v13 = vmul.f32 1.442695, %v525_v42  ;;  %1044 = vlog2.f32 %v456_v10  ;;  %v472_v54 = vmul.f32 0.6931472, %v1031_v38 }
 0x178   : > { %1046 = vpow2.f32 %v539_v9  ;;  %v526_v22 = vmul.f32 0.7, %v1413_v18  ;;  %v489_v45 = vadd.f32 %v470_v39, %v1304_v47 }
 0x179   : > { %v1033_v52 = vpop.eup %1032  ;;  %1048 = vpow2.f32 %v541_v13  ;;  %v490_v21 = vadd.f32 %v472_v54, %v1302_v46  ;;  %v511_v46 = vsub.f32 0.0, %v1406_v6 }
 0x17a   : > { %v1035_v57 = vpop.eup %1034  ;;  %v543_v58 = vmul.f32 1.442695, %v526_v22  ;;  %v474_v59 = vmul.f32 0.6931472, %v1033_v52  ;;  %v1419_v17 = vsub.f32 %v321_v50, %v489_v45  ;;  %v318_v60 = vpop.xlane.xlu0 %317  ;;  %v513_v22 = vsub.f32 0.0, %v1413_v18 }
 0x17b   : > { %v327_v25 = vpop.xlane.xlu1 %326  ;;  %v1421_v53 = vsub.f32 %v318_v60, %v488_v56  ;;  %v476_v63 = vmul.f32 0.6931472, %v1035_v57 }
 0x17c   : > { %1050 = vpow2.f32 %v543_v58  ;;  %v528_v47 = vmul.f32 0.7, %v1419_v17  ;;  %v491_v61 = vadd.f32 %v474_v59, %v1308_v49  ;;  %v515_v18 = vsub.f32 0.0, %v1419_v17 }
 0x17d   : > { %v1037_v62 = vpop.eup %1036  ;;  %v527_v44 = vmul.f32 0.7, %v1421_v53  ;;  %v492_v43 = vadd.f32 %v476_v63, %v1306_v48 }
 0x17e   : > { %v1039_v4 = vpop.eup %1038  ;;  %v547_v8 = vmul.f32 1.442695, %v528_v47  ;;  %v1431_v2 = vsub.f32 %v327_v25, %v491_v61  ;;  %v324_v11 = vpop.xlane.xlu0 %323  ;;  %v478_v16 = vmul.f32 0.6931472, %v1037_v62  ;;  %v514_v62 = vsub.f32 0.0, %v1421_v53 }
 0x17f   : > { %v1041_v12 = vpop.eup %1040  ;;  %v562_v15 = vmul.f32 0.7, %v1039_v4  ;;  %v545_v49 = vmul.f32 1.442695, %v527_v44  ;;  %v1433_v20 = vsub.f32 %v324_v11, %v490_v21  ;;  %v333_v23 = vpop.xlane.xlu1 %332 }
 0x180   : > { %v1043_v1 = vpop.eup %1042  ;;  %v561_v26 = vmul.f32 0.7, %v1041_v12  ;;  %1052 = vpow2.f32 %v547_v8  ;;  %v530_v19 = vmul.f32 0.7, %v1431_v2  ;;  %v493_v40 = vadd.f32 %v478_v16, %v1318_v55 }
 0x181   : > { %v1045_v24 = vpop.eup %1044  ;;  %v575_v27 = vmul.f32 %v562_v15, %v510_v5  ;;  %v480_v28 = vmul.f32 0.6931472, %v1043_v1  ;;  %1054 = vpow2.f32 %v545_v49  ;;  %v529_v32 = vmul.f32 0.7, %v1433_v20 }
 0x182   : > { %v1047_v29 = vpop.eup %1046  ;;  %v574_v41 = vmul.f32 %v561_v26, %v509_v7  ;;  %v482_v30 = vmul.f32 0.6931472, %v1045_v24  ;;  %v551_v31 = vmul.f32 1.442695, %v530_v19  ;;  %v330_v33 = vpop.xlane.xlu0 %329  ;;  %v506_v38 = vsub.f32 %v333_v23, %v493_v40 }
 0x183   : > { %v1049_v34 = vpop.eup %1048  ;;  %589 = vst.msk [vmem:[%s1440_s29 + $0x8] sm:$0xff] %vm587_vm14, %v575_v27  ;;  %v563_v6 = vmul.f32 0.7, %v1047_v29  ;;  %v1446_v48 = vsub.f32 %v330_v33, %v492_v43  ;;  %v549_v36 = vmul.f32 1.442695, %v529_v32  ;;  %v339_v39 = vpop.xlane.xlu1 %338  ;;  %v494_v14 = vadd.f32 %v480_v28, %v1310_v51 }
 0x184   : > { %588 = vst.msk [vmem:[%s1440_s29] sm:$0xff] %vm587_vm14, %v574_v41  ;;  %v564_v35 = vmul.f32 0.7, %v1049_v34  ;;  %1056 = vpow2.f32 %v551_v31  ;;  %v495_v42 = vadd.f32 %v482_v30, %v1327_v0  ;;  %v532_v0 = vmul.f32 0.7, %v506_v38 }
 0x185   : > { %v576_v37 = vmul.f32 %v563_v6, %v511_v46  ;;  %v531_v9 = vmul.f32 0.7, %v1446_v48  ;;  %1058 = vpow2.f32 %v549_v36  ;;  %v517_v5 = vsub.f32 0.0, %v1431_v2 }
 0x186   : > { %v1051_v10 = vpop.eup %1050  ;;  %v577_v55 = vmul.f32 %v564_v35, %v512_v3  ;;  %v508_v50 = vsub.f32 %v339_v39, %v495_v42  ;;  %v336_v13 = vpop.xlane.xlu0 %335  ;;  %v555_v58 = vmul.f32 1.442695, %v532_v0  ;;  %v516_v11 = vsub.f32 0.0, %v1433_v20 }
 0x187   : > { %590 = vst.msk [vmem:[%s1440_s29 + $0x10] sm:$0xff] %vm587_vm14, %v576_v37  ;;  %v565_v45 = vmul.f32 0.7, %v1051_v10  ;;  %v507_v52 = vsub.f32 %v336_v13, %v494_v14  ;;  %v553_v54 = vmul.f32 1.442695, %v531_v9  ;;  %v518_v49 = vsub.f32 0.0, %v1446_v48 }
 0x188   : > { %591 = vst.msk [vmem:[%s1440_s29 + $0x18] sm:$0xff] %vm587_vm14, %v577_v55  ;;  %v534_v56 = vmul.f32 0.7, %v508_v50  ;;  %v519_v1 = vsub.f32 0.0, %v506_v38  ;;  %v521_v19 = vsub.f32 0.0, %v508_v50 }
 0x189   : > { %v578_v57 = vmul.f32 %v565_v45, %v513_v22  ;;  %v533_v51 = vmul.f32 0.7, %v507_v52  ;;  %1060 = vpow2.f32 %v553_v54  ;;  %v520_v28 = vsub.f32 0.0, %v507_v52 }
 0x18a   : > { %v1053_v59 = vpop.eup %1052  ;;  %v559_v60 = vmul.f32 1.442695, %v534_v56  ;;  %1062 = vpow2.f32 %v555_v58 }
 0x18b   : > { %v1055_v25 = vpop.eup %1054  ;;  %592 = vst.msk [vmem:[%s1440_s29 + $0x20] sm:$0xff] %vm587_vm14, %v578_v57  ;;  %v567_v47 = vmul.f32 0.7, %v1053_v59  ;;  %v557_v61 = vmul.f32 1.442695, %v533_v51 }
 0x18c   : > { %v566_v63 = vmul.f32 0.7, %v1055_v25  ;;  %1064 = vpow2.f32 %v559_v60 }
 0x18d   : > { %v580_v44 = vmul.f32 %v567_v47, %v515_v18  ;;  %1066 = vpow2.f32 %v557_v61 }
 0x18e   : > { %v1057_v21 = vpop.eup %1056  ;;  %v579_v4 = vmul.f32 %v566_v63, %v514_v62 }
 0x18f   : > { %594 = vst.msk [vmem:[%s1440_s29 + $0x30] sm:$0xff] %vm587_vm14, %v580_v44  ;;  %v569_v7 = vmul.f32 0.7, %v1057_v21  ;;  %v1059_v8 = vpop.eup %1058 }
 0x190   : > { %593 = vst.msk [vmem:[%s1440_s29 + $0x28] sm:$0xff] %vm587_vm14, %v579_v4  ;;  %v568_v12 = vmul.f32 0.7, %v1059_v8 }
 0x191   : > { %v582_v17 = vmul.f32 %v569_v7, %v517_v5 }
 0x192   : > { %v581_v53 = vmul.f32 %v568_v12, %v516_v11 }
 0x193   : > { %596 = vst.msk [vmem:[%s1440_s29 + $0x40] sm:$0xff] %vm587_vm14, %v582_v17  ;;  %v1061_v15 = vpop.eup %1060 }
 0x194   : > { %v1063_v16 = vpop.eup %1062  ;;  %595 = vst.msk [vmem:[%s1440_s29 + $0x38] sm:$0xff] %vm587_vm14, %v581_v53  ;;  %v570_v2 = vmul.f32 0.7, %v1061_v15 }
 0x195   : > { %v571_v26 = vmul.f32 0.7, %v1063_v16 }
 0x196   : > { %v1065_v23 = vpop.eup %1064  ;;  %v583_v20 = vmul.f32 %v570_v2, %v518_v49  ;;  %607 = sbr.rel (!%p1201_p4) target bundleno = 474 (0x1da), region = 32 }
 0x197   : > { %v1067_v46 = vpop.eup %1066  ;;  %v573_v24 = vmul.f32 0.7, %v1065_v23  ;;  %v584_v27 = vmul.f32 %v571_v26, %v519_v1 }
 0x198   : > { %v572_v43 = vmul.f32 0.7, %v1067_v46  ;;  %597 = vst.msk [vmem:[%s1440_s29 + $0x48] sm:$0xff] %vm587_vm14, %v583_v20 }
 0x199   : > { %v586_v29 = vmul.f32 %v573_v24, %v521_v19  ;;  %598 = vst.msk [vmem:[%s1440_s29 + $0x50] sm:$0xff] %vm587_vm14, %v584_v27 }
 0x19a   : > { %v585_v41 = vmul.f32 %v572_v43, %v520_v28 }
 0x19b   : > { %600 = vst.msk [vmem:[%s1440_s29 + $0x60] sm:$0xff] %vm587_vm14, %v586_v29 }
 0x19c   : > { %599 = vst.msk [vmem:[%s1440_s29 + $0x58] sm:$0xff] %vm587_vm14, %v585_v41 }
 0x19d   : > { %s1581_s30 = smov (!%p610_p8, %s609_s30), 13 }
 0x19e   : > { %s884_s7 = sshll.u32 %s1581_s30, 7 }
 0x19f   : > { %p887_p9 = scmp.eq.s32.totalorder %s884_s7, 0 }
 0x1a0   : > { %1068 = sdivrem.u32 (!%p887_p9), %s1581_s30, 13 }
 0x1a1   : > { %618 = sbr.rel (%p887_p9) target bundleno = 474 (0x1da), region = 36 }
 0x1a9   : > { %s1494_s8 = spop.drf %1068 }
 0x1aa   : > { %p888_p10 = scmp.le.s32.totalorder %s1494_s8, 0 }
 0x1ab   : > { %s1574_s9 = smov (!%p888_p10), %s1488_s6  ;;  %s1575_s11 = smov (!%p888_p10), %s1440_s29 }
 0x1ac   : > { %828 = sbr.rel (%p888_p10) target bundleno = 445 (0x1bd), region = 115  ;;  %s1503_s12 = smov (!%p888_p10), 0  }
 0x1ad   : > { %s1505_s14 = smov (!%p888_p10), 0  }
 0x1b3 LB: >> { %v706_v30 = vld [vmem:[%s1134_s11] sm:$0xff]  ;;  %v708_v31 = vld [vmem:[%s1134_s11 + $0x8] sm:$0xff]  ;;  %v710_v32 = vld [vmem:[%s1134_s11 + $0x10] sm:$0xff]  ;;  %s732_s15 = sadd.s32 1, %s1138_s12  ;;  %s700_s14 = sadd.s32 1, %s1142_s14   ;;  %s1142_s14 = sphi %s1505_s14, %s700_s14   ;;  %s1138_s12 = sphi %s1503_s12, %s1576_s12   ;;  %s1134_s11 = sphi %s1575_s11, %s737_s11   ;;  %s1130_s9 = sphi %s1574_s9, %s738_s9  }
 0x1b4   : >> { %707 = vst [vmem:[%s1130_s9] sm:$0xff] %v706_v30  ;;  %709 = vst [vmem:[%s1130_s9 + $0x8] sm:$0xff] %v708_v31  ;;  %v712_v33 = vld [vmem:[%s1134_s11 + $0x18] sm:$0xff]  ;;  %v714_v34 = vld [vmem:[%s1134_s11 + $0x20] sm:$0xff]  ;;  %p733_p11 = scmp.ge.s32.totalorder %s732_s15, %s1494_s8  ;;  %p699_p12 = scmp.ge.s32.totalorder %s700_s14, %s1494_s8 }
 0x1b5   : >> { %711 = vst [vmem:[%s1130_s9 + $0x10] sm:$0xff] %v710_v32  ;;  %v716_v6 = vld [vmem:[%s1134_s11 + $0x28] sm:$0xff]  ;;  %713 = vst [vmem:[%s1130_s9 + $0x18] sm:$0xff] %v712_v33  ;;  %v718_v3 = vld [vmem:[%s1134_s11 + $0x30] sm:$0xff] }
 0x1b6   : >> { %715 = vst [vmem:[%s1130_s9 + $0x20] sm:$0xff] %v714_v34  ;;  %717 = vst [vmem:[%s1130_s9 + $0x28] sm:$0xff] %v716_v6  ;;  %v720_v40 = vld [vmem:[%s1134_s11 + $0x38] sm:$0xff]  ;;  %v722_v48 = vld [vmem:[%s1134_s11 + $0x40] sm:$0xff]  ;;  %s1583_s15 = smov (%p733_p11, %s732_s15), 0  ;;  %702 = sbr.rel (!%p699_p12) target bundleno = 435 (0x1b3), region = 121 }
 0x1b7   : >> { %719 = vst [vmem:[%s1130_s9 + $0x30] sm:$0xff] %v718_v3  ;;  %721 = vst [vmem:[%s1130_s9 + $0x38] sm:$0xff] %v720_v40  ;;  %v724_v35 = vld [vmem:[%s1134_s11 + $0x48] sm:$0xff]  ;;  %v726_v36 = vld [vmem:[%s1134_s11 + $0x50] sm:$0xff]  ;;  %s735_s17 = smul.u32 104, %s1583_s15  ;;  %s1576_s12 = smov %s1583_s15 }
 0x1b8   : >> { %723 = vst [vmem:[%s1130_s9 + $0x40] sm:$0xff] %v722_v48  ;;  %v728_v42 = vld [vmem:[%s1134_s11 + $0x58] sm:$0xff]  ;;  %725 = vst [vmem:[%s1130_s9 + $0x48] sm:$0xff] %v724_v35  ;;  %v730_v37 = vld [vmem:[%s1134_s11 + $0x60] sm:$0xff] }
 0x1b9   : >> { %727 = vst [vmem:[%s1130_s9 + $0x50] sm:$0xff] %v726_v36  ;;  %729 = vst [vmem:[%s1130_s9 + $0x58] sm:$0xff] %v728_v42  ;;  %s737_s11 = scalar_lea.vmem %s1440_s29, %s735_s17 [#allocation2]  }
 0x1ba   : >> { %731 = vst [vmem:[%s1130_s9 + $0x60] sm:$0xff] %v730_v37  ;;  %s738_s9 = scalar_lea.vmem %s1488_s6, %s735_s17  }
 0x1bd PF: > { %1070 = sdivrem.u32 %s1581_s30, 13 }
 0x1be   : > { %s889_s18 = smul.u32 104, %s1494_s8 }
 0x1c0   : > { %s743_s19 = scalar_lea.vmem %s1440_s29, %s889_s18 [#allocation2]   ;;  %s745_s20 = scalar_lea.vmem %s1488_s6, %s889_s18  }
 0x1c6   : > { %s1071_s21 = spop.drf %1070 }
 0x1c7   : > { %p891_p13 = scmp.le.s32.totalorder %s1071_s21, 0 }
 0x1c8   : > { %s1144_s22 = smov (!%p891_p13), %s745_s20   ;;  %s1148_s23 = smov (!%p891_p13), %s743_s19  }
 0x1c9   : > { %842 = sbr.rel (%p891_p13) target bundleno = 474 (0x1da), region = 126  ;;  %s1152_s24 = smov (!%p891_p13), 0  }
 0x1ca   : > { %s1156_s25 = smov (!%p891_p13), 0  }
 0x1d0 LB: >> { %v755_v38 = vld [vmem:[%s1150_s23] sm:$0xff]  ;;  %s757_s26 = sadd.s32 1, %s1154_s24  ;;  %s749_s25 = sadd.s32 1, %s1158_s25   ;;  %s1158_s25 = sphi %s1156_s25, %s749_s25   ;;  %s1154_s24 = sphi %s1152_s24, %s1153_s24   ;;  %s1150_s23 = sphi %s1148_s23, %s762_s23   ;;  %s1146_s22 = sphi %s1144_s22, %s763_s22  }
 0x1d1   : >> { %756 = vst [vmem:[%s1146_s22] sm:$0xff] %v755_v38  ;;  %p758_p0 = scmp.ge.s32.totalorder %s757_s26, %s1071_s21  ;;  %p748_p1 = scmp.ge.s32.totalorder %s749_s25, %s1071_s21 }
 0x1d3   : >> { %s1585_s26 = smov (%p758_p0, %s757_s26), 0  ;;  %751 = sbr.rel (!%p748_p1) target bundleno = 464 (0x1d0), region = 132 }
 0x1d4   : >> { %s892_s27 = sshll.u32 %s1585_s26, 3  ;;  %s1153_s24 = smov %s1585_s26  }
 0x1d5   : >> { %s762_s23 = scalar_lea.vmem %s743_s19, %s892_s27 [#allocation2]   ;;  %s763_s22 = scalar_lea.vmem %s745_s20, %s892_s27  }
 0x1da PF: > { %p9_p2 = scmp.ge.s32.totalorder %s1191_s13, 4   ;;  %s1577_s9 = smov %s1122_s10 }
 0x1db   : > { %s1578_s10 = smov %s1199_s16  ;;  %s1579_s11 = smov %s1191_s13 }
 0x1dc   :  { %11 = sbr.rel (!%p9_p2) target bundleno = 2 (0x2), region = 143 }

</bundles_post_ra>
